<compile_context>
chip_gen: v7x
topology: tpu7x:2x2x1
jax: 0.10.0
libtpu: 0.0.40
codegen_flags: <defaults>
</compile_context>

<pallas_src>
import math

import jax
import jax.numpy as jnp
from jax.experimental import pallas as pl
from jax.experimental.pallas import tpu as pltpu


def _round_up(n, m):
    return ((n + m - 1) // m) * m


def _cdiv(a, b):
    return (a + b - 1) // b


def _vmem_budget_bytes():
    """Generation-aware budget for double-buffered tiles (bytes)."""
    cap = None
    try:
        info = pltpu.get_tpu_info()
        cap = getattr(info, "vmem_capacity_bytes", None)
    except Exception:
        cap = None
    if not cap:
        cap = 64 * 1024 * 1024  # conservative default (v7x has 64 MiB / TC)
    # ~3/4 of physical, capped at 96 MiB (v5e/v6e), floor 16 MiB.
    return max(16 * 1024 * 1024, min((cap * 3) // 4, 96 * 1024 * 1024))


def _dce_kernel(x_ref, c_ref, csq_ref, o_ref):
    # x_ref:   (TM, D)       native dtype (f32 / bf16)
    # c_ref:   (D, TN or C)  native dtype (whole centers matrix when resident)
    # csq_ref: (1, TN or C)  f32  precomputed ||center||^2 per column
    # o_ref:   (TM, TN or C) f32
    x = x_ref[...]
    xf = x.astype(jnp.float32)
    # ||x||^2 computed in-kernel from the already-resident x tile (VPU/XLU
    # filler; hidden under the MXU / DMA critical path in this mem-bound regime).
    fsq = jnp.sum(xf * xf, axis=1, keepdims=True)                      # (TM, 1)
    xc = jnp.dot(x, c_ref[...], preferred_element_type=jnp.float32)    # (TM, TN)
    # -dist = 2*x@c - ||x||^2 - ||c||^2   (fused epilogue, f32)
    o_ref[...] = 2.0 * xc - fsq - csq_ref[...]


def dce_loss_forward(x, centers, *, tm_max=512, tn_max=1024, centers_resident=None):
    """Returns (centers, -dist) matching the PyTorch module's forward."""
    B, D = x.shape
    Dc, C = centers.shape
    assert D == Dc, "feat_dim mismatch"

    xb = jnp.dtype(x.dtype).itemsize
    cb = jnp.dtype(centers.dtype).itemsize
    budget = _vmem_budget_bytes()

    # ||c||^2 once, in f32 (single tiny XLA reduce; reads centers once).
    cents_sq = jnp.sum(centers.astype(jnp.float32) ** 2, axis=0, keepdims=True)  # (1, C)

    # Decide whether the whole centers matrix (+ csq) can stay VMEM-resident.
    resident_bytes = 2 * (D * C * cb + C * 4)  # worst case: double-buffered
    if centers_resident is None:
        centers_resident = resident_bytes <= budget // 3

    compiler_kwargs = dict(vmem_limit_bytes=int(budget))

    if centers_resident:
        # ---- 1-D grid over B tiles; centers + csq resident (fetched once). ----
        per_row = 2 * (D * xb + C * 4)  # double-buffered x-tile row + out-tile row
        tm_fit = max(8, ((budget - resident_bytes) // per_row) // 8 * 8)
        TM = max(8, min(tm_max, _round_up(B, 8), tm_fit))
        nB = _cdiv(B, TM)
        # v7x has 2 TensorCores: give the parallel axis >= 2 steps when B allows.
        if nB == 1 and B > 8:
            TM = _round_up(_cdiv(B, 2), 8)
            nB = _cdiv(B, TM)

        cost = pl.CostEstimate(
            flops=2 * B * D * C + 2 * B * D + 3 * B * C,
            transcendentals=0,
            bytes_accessed=xb * B * D + cb * D * C + 4 * C + 4 * B * C,
        )
        neg_dist = pl.pallas_call(
            _dce_kernel,
            out_shape=jax.ShapeDtypeStruct((B, C), jnp.float32),
            grid=(nB,),
            in_specs=[
                pl.BlockSpec((TM, D), lambda i: (i, 0)),   # x tile (streamed)
                pl.BlockSpec((D, C), lambda i: (0, 0)),    # centers (resident)
                pl.BlockSpec((1, C), lambda i: (0, 0)),    # ||c||^2 (resident)
            ],
            out_specs=pl.BlockSpec((TM, C), lambda i: (i, 0)),
            compiler_params=pltpu.CompilerParams(
                dimension_semantics=("parallel",), **compiler_kwargs),
            cost_estimate=cost,
        )(x, centers, cents_sq)
        return centers, neg_dist

    # ---- 2-D tiled fallback (centers too large to keep resident). ----
    TM = max(8, min(tm_max, _round_up(B, 8)))
    TN = max(128, min(tn_max, _round_up(C, 128)))

    def vmem_need(tm, tn):
        return 2 * (tm * D * xb + D * tn * cb + tn * 4 + tm * tn * 4)

    while vmem_need(TM, TN) > budget and (TM > 8 or TN > 128):
        # Shrink whichever tile dimension frees more bytes.
        tm_cost = TM * (D * xb + TN * 4)
        tn_cost = TN * (D * cb + TM * 4)
        if TM > 8 and (TN <= 128 or tm_cost >= tn_cost):
            TM = max(8, _round_up(TM // 2, 8))
        else:
            TN = max(128, _round_up(TN // 2, 128))

    nB = _cdiv(B, TM)
    nC = _cdiv(C, TN)

    cost = pl.CostEstimate(
        flops=2 * B * D * C + 2 * B * D + 3 * B * C,
        transcendentals=0,
        bytes_accessed=xb * B * D + cb * D * C + 4 * C + 4 * B * C,
    )

    # Pick the grid-axis order that minimizes re-streamed HBM bytes: the
    # operand fixed on the inner axis is fetched once; the other is re-read
    # (num outer steps) times.
    restream_centers = nB * D * C * cb   # B-tiles outer, C-tiles inner
    restream_x = nC * B * D * xb         # C-tiles outer, B-tiles inner
    if restream_centers <= restream_x:
        grid = (nB, nC)
        in_specs = [
            pl.BlockSpec((TM, D), lambda i, j: (i, 0)),
            pl.BlockSpec((D, TN), lambda i, j: (0, j)),
            pl.BlockSpec((1, TN), lambda i, j: (0, j)),
        ]
        out_spec = pl.BlockSpec((TM, TN), lambda i, j: (i, j))
    else:
        grid = (nC, nB)
        in_specs = [
            pl.BlockSpec((TM, D), lambda j, i: (i, 0)),
            pl.BlockSpec((D, TN), lambda j, i: (0, j)),
            pl.BlockSpec((1, TN), lambda j, i: (0, j)),
        ]
        out_spec = pl.BlockSpec((TM, TN), lambda j, i: (i, j))

    neg_dist = pl.pallas_call(
        _dce_kernel,
        out_shape=jax.ShapeDtypeStruct((B, C), jnp.float32),
        grid=grid,
        in_specs=in_specs,
        out_specs=out_spec,
        compiler_params=pltpu.CompilerParams(
            dimension_semantics=("parallel", "parallel"), **compiler_kwargs),
        cost_estimate=cost,
    )(x, centers, cents_sq)
    return centers, neg_dist


def init_centers(key, feat_dim, n_classes):
    # nn.init.kaiming_normal_ default: fan_in mode, gain=sqrt(2).
    # For a (feat_dim, n_classes) tensor, fan_in = n_classes (dim 1).
    std = math.sqrt(2.0) / math.sqrt(n_classes)
    return std * jax.random.normal(key, (feat_dim, n_classes), dtype=jnp.float32)


def _reference(x, centers):
    feats_sq = jnp.sum(x * x, axis=1, keepdims=True)
    cents_sq = jnp.sum(centers * centers, axis=0, keepdims=True)
    xc2 = 2.0 * (x @ centers)
    return -(feats_sq + cents_sq - xc2)


if __name__ == "__main__":
    key = jax.random.PRNGKey(0)
    k_x, k_c, k_x2, k_c2 = jax.random.split(key, 4)

    # 1) Small demo matching the module: batch=8, feat_dim=32, n_classes=16
    #    (centers-resident path, single/few-tile grid).
    batch, feat_dim, n_classes = 8, 32, 16
    x = jax.random.normal(k_x, (batch, feat_dim), dtype=jnp.float32)
    centers = init_centers(k_c, feat_dim, n_classes)

    cents_out, neg_dist = dce_loss_forward(x, centers)
    neg_dist = jax.block_until_ready(neg_dist)
    ref = _reference(x, centers)
    assert neg_dist.shape == (batch, n_classes)
    assert jnp.allclose(neg_dist, ref, atol=1e-4, rtol=1e-4), "mismatch (small/resident)"
    assert jnp.array_equal(cents_out, centers)

    # 2) Ragged (non-tile-multiple) B and C through the tiled fallback path
    #    (forced non-resident, small tile caps) -> exercises edge clipping and
    #    the dynamically chosen grid-axis order, with no wrapper pad/slice.
    B2, D2, C2 = 200, 96, 300
    x2 = jax.random.normal(k_x2, (B2, D2), dtype=jnp.float32)
    c2 = init_centers(k_c2, D2, C2)
    _, nd2 = dce_loss_forward(x2, c2, tm_max=64, tn_max=128, centers_resident=False)
    nd2 = jax.block_until_ready(nd2)
    ref2 = _reference(x2, c2)
    assert nd2.shape == (B2, C2)
    assert jnp.allclose(nd2, ref2, atol=2e-3, rtol=1e-4), "mismatch (tiled/ragged)"

    # 3) Native bf16 inputs on the resident path (f32 accumulation + f32 norms
    #    keep the result close to the f32 reference built from the same bf16
    #    values), with a ragged last B tile.
    x3 = jax.random.normal(k_x2, (50, 64), dtype=jnp.bfloat16)
    c3 = init_centers(k_c2, 64, 40).astype(jnp.bfloat16)
    _, nd3 = dce_loss_forward(x3, c3)
    nd3 = jax.block_until_ready(nd3)
    ref3 = _reference(x3.astype(jnp.float32), c3.astype(jnp.float32))
    assert nd3.shape == (50, 40)
    assert jnp.allclose(nd3, ref3, atol=5e-2, rtol=5e-2), "mismatch (bf16/resident)"

    print("KERNEL_OK")
</pallas_src>

<mosaic_0001>
module attributes {stable_mosaic.version = 11 : i64} {
  func.func @_dce_kernel(%arg0: i32, %arg1: memref<8x32xf32, #tpu.memory_space<vmem>>, %arg2: memref<32x16xf32, #tpu.memory_space<vmem>>, %arg3: memref<1x16xf32, #tpu.memory_space<vmem>>, %arg4: memref<8x16xf32, #tpu.memory_space<vmem>>) attributes {dimension_semantics = [#tpu.dimension_semantics<parallel>], iteration_bounds = array<i64: 1>, scalar_prefetch = 0 : i64, scratch_operands = 0 : i64, tpu.core_type = #tpu.core_type<tc>, window_params = [{transform_indices = @transform_0, window_bounds = array<i64: 8, 32>}, {pipeline_mode = #tpu.pipeline_mode<synchronous>, transform_indices = @transform_1, window_bounds = array<i64: 32, 16>}, {pipeline_mode = #tpu.pipeline_mode<synchronous>, transform_indices = @transform_2, window_bounds = array<i64: 1, 16>}, {transform_indices = @transform_3, window_bounds = array<i64: 8, 16>}]} {
    %c0 = arith.constant 0 : index
    %c0_0 = arith.constant 0 : index
    %0 = vector.load %arg1[%c0, %c0_0] : memref<8x32xf32, #tpu.memory_space<vmem>>, vector<8x32xf32>
    %1 = arith.mulf %0, %0 : vector<8x32xf32>
    %cst = arith.constant dense<0.000000e+00> : vector<8xf32>
    %2 = vector.multi_reduction <add>, %1, %cst [1] : vector<8x32xf32> to vector<8xf32>
    %3 = vector.shape_cast %2 : vector<8xf32> to vector<8x1xf32>
    %c0_1 = arith.constant 0 : index
    %c0_2 = arith.constant 0 : index
    %4 = vector.load %arg2[%c0_1, %c0_2] : memref<32x16xf32, #tpu.memory_space<vmem>>, vector<32x16xf32>
    %cst_3 = arith.constant dense<0.000000e+00> : vector<8x16xf32>
    %5 = tpu.matmul %0, %4, %cst_3 {dimension_numbers = #tpu.dot_dimension_numbers<[1], [0], [0], [1], [0, 0, 1, 1], [], []>} : vector<8x32xf32>, vector<32x16xf32>, vector<8x16xf32> -> vector<8x16xf32>
    %cst_4 = arith.constant 2.000000e+00 : f32
    %6 = vector.broadcast %cst_4 : f32 to vector<8x16xf32>
    %7 = arith.mulf %6, %5 : vector<8x16xf32>
    %8 = vector.broadcast %3 : vector<8x1xf32> to vector<8x16xf32>
    %9 = arith.subf %7, %8 : vector<8x16xf32>
    %c0_5 = arith.constant 0 : index
    %c0_6 = arith.constant 0 : index
    %10 = vector.load %arg3[%c0_5, %c0_6] : memref<1x16xf32, #tpu.memory_space<vmem>>, vector<1x16xf32>
    %11 = vector.broadcast %10 : vector<1x16xf32> to vector<8x16xf32>
    %12 = arith.subf %9, %11 : vector<8x16xf32>
    %c0_7 = arith.constant 0 : index
    %c0_8 = arith.constant 0 : index
    %13 = vector.load %arg4[%c0_7, %c0_8] : memref<8x16xf32, #tpu.memory_space<vmem>>, vector<8x16xf32>
    tpu.vector_store %arg4[%c0_7, %c0_8], %12 {strides = array<i32>} : memref<8x16xf32, #tpu.memory_space<vmem>>, vector<8x16xf32>,
    return
  }
  func.func @transform_0(%arg0: i32) -> (i32, i32) {
    %c0_i32 = arith.constant 0 : i32
    %c0_i32_0 = arith.constant 0 : i32
    return %arg0, %c0_i32 : i32, i32
  }
  func.func @transform_1(%arg0: i32) -> (i32, i32) {
    %c0_i32 = arith.constant 0 : i32
    %c0_i32_0 = arith.constant 0 : i32
    %c0_i32_1 = arith.constant 0 : i32
    return %c0_i32, %c0_i32_0 : i32, i32
  }
  func.func @transform_2(%arg0: i32) -> (i32, i32) {
    %c0_i32 = arith.constant 0 : i32
    %c0_i32_0 = arith.constant 0 : i32
    %c0_i32_1 = arith.constant 0 : i32
    return %c0_i32, %c0_i32_0 : i32, i32
  }
  func.func @transform_3(%arg0: i32) -> (i32, i32) {
    %c0_i32 = arith.constant 0 : i32
    %c0_i32_0 = arith.constant 0 : i32
    return %arg0, %c0_i32 : i32, i32
  }
}

</mosaic_0001>

<bundles_post_ra>
// kernel: tpu_custom_call.1
= control target key start
LH: loop header
LB: loop body
LE: loop exit
PB: predicated region body
PF: predicated region fallthrough
CT: control target
= control target key end

     0   :  { %v176_v3 = vmov 0.0|0.0   ;;  %vm177_vm0 = vmmov 0   ;;  %v178_v6 = vmov 0.0   ;;  %s230_s0 = inlined_call_operand.vmem [shape: f32[8,32], index: 0, kind: input, shape index: {}]   ;;  %s231_s1 = inlined_call_operand.vmem [shape: f32[32,16], index: 1, kind: input, shape index: {}]   ;;  %s232_s2 = inlined_call_operand.vmem [shape: f32[1,16], index: 2, kind: input, shape index: {}]   ;;  %s233_s3 = inlined_call_operand.hbm [shape: f32[8,16], index: 3, kind: output, shape index: {}]  }
   0x1   :  { %v21_v0 = vld [vmem:[%s231_s1] sm:$0xff]  ;;  %v22_v1 = vld [vmem:[%s231_s1 + $0x8] sm:$0xff]  ;;  %v23_v2 = vld [vmem:[%s231_s1 + $0x10] sm:$0xff]  ;;  %142 = vmatprep.subr.bf16.mxu0 %v176_v3  ;;  %139 = vmatprep.mubr.msk.f32.mxu0 %vm177_vm0, %v178_v6 }
   0x2   :  { %v143_v4 = vpack.c.bf16 %v22_v1, %v21_v0  ;;  %v24_v5 = vld [vmem:[%s231_s1 + $0x18] sm:$0xff]  ;;  %v15_v7 = vld [vmem:[%s230_s0] sm:$0xff] }
   0x3   :  { %8 = vsyncpa [#allocation3], 0  ;;  %v16_v8 = vmul.f32 %v15_v7, %v15_v7  ;;  %v146_v9 = vpack.c.bf16 %v24_v5, %v23_v2  ;;  %vm17_vm1 = vcmask 261120   ;;  %v125_v15 = vld [vmem:[%s232_s2] ss:$0 sm:$0xff]  ;;  %s179_s23 = smov [#allocation2]  }
   0x4   :  { %144 = vmatpush3.bf16.msra.mxu0 %v143_v4  ;;  %s116_s0 = sshll.u32 %s179_s23, 4  ;;  %vm108_vm2 = vcmask 130048   ;;  %s117_s0 = int_to_ptr.vmem [resolvable:$true] %s116_s0 }
   0x5   :  { %145 = vmatprep.subr.bf16.mxu0 %v176_v3  ;;  %v18_v10 = vsel %vm17_vm1, %v16_v8, 0.0  ;;  %s152_s24 = scalar_lea.vmem %s117_s0, 128  ;;  %p157_p1 = scmp.lt.s32.totalorder %s117_s0, %s117_s0 }
   0x6   :  { %19 = vadd.xlane.f32.xlu0 %v18_v10  ;;  %p153_p0 = scmp.ne.s32.totalorder %s117_s0, %s152_s24  ;;  %p158_p2 = scmp.lt.s32.totalorder %s152_s24, %s152_s24 }
   0x8   :  { %147 = vmatpush3.bf16.msra.mxu0 %v146_v9  ;;  %p159_p3 = por %p158_p2, %p157_p1 }
   0xa   :  { %p160_p4 = pnand %p159_p3, %p153_p0 }
   0xb   :  { %140 = vmatmul.mubr.msk.f32.vlgmr.msra.gmra.mrb[0].mxu0 %vm17_vm1, %v15_v7 }
  0x93   :  { %v20_v12 = vpop.xlane.xlu0 %19 }
  0xde   :  { %v94_v11 = vpop.f32.mrb[0].mxu0 }
  0xdf   :  { %v98_v13 = vmul.f32 2.0, %v94_v11  ;;  %v141_v14 = vpop.f32.mrb[1].mxu0 }
  0xe1   :  { %v99_v16 = vsub.f32 %v98_v13, %v20_v12 }
  0xe3   :  { %v107_v17 = vsub.f32 %v99_v16, %v125_v15 }
  0xe5   :  { %109 = vst.msk [vmem:[#allocation2] sm:$0xff] %vm108_vm2, %v107_v17 }
  0xe6   :  { %163 = shalt.err (!%p160_p4)
}
  0xe7   :  { %s164_s27 = scalar_lea.hbm %s233_s3, 128 }
  0xe8   :  { %p165_p5 = scmp.ne.s32.totalorder %s233_s3, %s164_s27  ;;  %p168_p6 = scmp.lt.u32.totalorder %s164_s27, %s233_s3 }
  0xea   :  { %p170_p7 = pnand %p168_p6, %p165_p5 }
  0xec   :  { %173 = shalt.err (!%p170_p7)
}
  0xed   :  { %119 = dma.vmem_to_hbm [thread:$0]  %s117_s0, 128, %s233_s3, [#allocation3]  }
  0xee   :  { %174 = dma.done.wait [#allocation3], 128  }
  0xef   :  { %175 = vsyncadd [#allocation3], 4294967168 }
  0xf0   :  { %123 = vsyncpa [#allocation3], 1 }

</bundles_post_ra>
